<compile_context>
chip_gen: v7x
topology: tpu7x:2x2x1
jax: 0.10.0
libtpu: 0.0.40
codegen_flags: <defaults>
</compile_context>

<pallas_src>
import functools

import jax
import jax.numpy as jnp
from jax.experimental import pallas as pl
from jax.experimental.pallas import tpu as pltpu


def _vmem_capacity_bytes():
    """Per-core VMEM capacity; conservative (v7x-sized) fallback if unknown."""
    try:
        info = pltpu.get_tpu_info()
        for name in ("vmem_capacity_bytes", "vmem_size_bytes", "vmem_bytes"):
            v = getattr(info, name, None)
            if v:
                return int(v)
    except Exception:
        pass
    return 64 * 1024 * 1024


def _pick_hw_tile(hw, c, itemsize, target_bytes):
    """Largest HW tile (full HW, or a multiple of 512 lanes) with ~target_bytes per x block."""
    if hw * c * itemsize <= target_bytes:
        return hw
    tile = max(512, (target_bytes // (c * itemsize)) // 512 * 512)
    return min(tile, hw)


# --------------------------------------------------------------------------
# K1: ChannelAttention pooling + shared MLP -> ca = sigmoid(mlp(avg)+mlp(max))
# --------------------------------------------------------------------------
def _ca_pool_mlp_kernel(x_ref, w1_ref, w2_ref, ca_ref, sum_acc, max_acc,
                        *, hw, hw_tile, mask_tail):
    k = pl.program_id(1)
    nk = pl.num_programs(1)

    @pl.when(k == 0)
    def _init():
        sum_acc[...] = jnp.zeros_like(sum_acc)
        # -inf init is safe: cdiv guarantees the tail tile has >= 1 valid lane.
        max_acc[...] = jnp.full_like(max_acc, -jnp.inf)

    xt = x_ref[0].astype(jnp.float32)                        # (C, hw_tile)
    if mask_tail:
        lane = jax.lax.broadcasted_iota(jnp.int32, xt.shape, 1)
        valid = (k * hw_tile + lane) < hw
        x_sum = jnp.where(valid, xt, 0.0)
        x_max = jnp.where(valid, xt, -jnp.inf)
    else:
        x_sum = xt
        x_max = xt

    sum_acc[...] += jnp.sum(x_sum, axis=1, keepdims=True)     # (C, 1)
    max_acc[...] = jnp.maximum(max_acc[...],
                               jnp.max(x_max, axis=1, keepdims=True))

    @pl.when(k == nk - 1)
    def _finalize():
        avg = sum_acc[...] * (1.0 / hw)                       # divide by true HW
        pooled = jnp.concatenate([avg, max_acc[...]], axis=1)            # (C, 2)
        h = jnp.dot(w1_ref[...], pooled,
                    preferred_element_type=jnp.float32)                  # (Cr, 2)
        h = jnp.maximum(h, 0.0)                                           # ReLU
        o2 = jnp.dot(w2_ref[...], h,
                     preferred_element_type=jnp.float32)                 # (C, 2)
        ca_ref[0] = jax.nn.sigmoid(o2[:, 0:1] + o2[:, 1:2])              # (C, 1)


# --------------------------------------------------------------------------
# K2 (fused): channel mean/max of ca*x accumulated in VMEM + 7x7 conv + sigmoid
#             epilogue -> sa (B, 1, HW), lane dense.  ca*x and the pooled map
#             never touch HBM.
# --------------------------------------------------------------------------
def _sa_fused_kernel(x_ref, ca_ref, w_sa_ref, sa_ref, pooled_acc,
                     *, h, w, hw, hw_tile):
    k = pl.program_id(1)
    nk = pl.num_programs(1)

    # --- per-tile channel mean/max of ca*x into the resident pooled scratch.
    # NOTE: tail-tile lanes (>= HW) may hold stale VMEM garbage; that's fine
    # because the channel reductions are per-lane and those lanes are sliced
    # off in the epilogue.  Never add a lane-axis reduction here w/o masking.
    xt = x_ref[0].astype(jnp.float32)                         # (C, hw_tile)
    scaled = xt * ca_ref[0]                                   # (C, 1) broadcast
    ch_avg = jnp.mean(scaled, axis=0, keepdims=True)          # (1, hw_tile)
    ch_max = jnp.max(scaled, axis=0, keepdims=True)           # (1, hw_tile)
    start = k * hw_tile
    if hw_tile % 128 == 0:
        start = pl.multiple_of(start, hw_tile)
    pooled_acc[:, pl.ds(start, hw_tile)] = jnp.concatenate([ch_avg, ch_max],
                                                           axis=0)

    # --- epilogue: 7x7 (2 -> 1, zero-pad 3) conv + sigmoid on the flat pooled
    # map, via 7 lane rolls + 7 row rolls + iota masks (no unaligned slices).
    @pl.when(k == nk - 1)
    def _conv_sigmoid():
        L = pooled_acc.shape[1]                               # nk*hw_tile >= hw
        pooled = pooled_acc[...]                              # (2, L)
        lane = jax.lax.broadcasted_iota(jnp.int32, (1, L), 1)
        row = lane // w
        col = lane % w

        # 7 lane-rolled + column-masked copies (dj offsets b = -3..3).
        shifted = []
        for b in range(-3, 4):
            sh = pltpu.roll(pooled, shift=(-b) % L, axis=1)   # p -> pooled[p+b]
            col_ok = jnp.logical_and(col + b >= 0, col + b < w)
            shifted.append(jnp.where(col_ok, sh, 0.0))        # (2, L)

        acc = jnp.zeros((1, L), jnp.float32)
        for a in range(-3, 4):                                # di offsets
            rp = jnp.zeros((1, L), jnp.float32)
            for bi, b in enumerate(range(-3, 4)):
                sh = shifted[bi]
                w0 = w_sa_ref[(a + 3) * 7 + (b + 3)]          # ch-0 weight (SMEM)
                w1 = w_sa_ref[49 + (a + 3) * 7 + (b + 3)]     # ch-1 weight (SMEM)
                rp = rp + w0 * sh[0:1, :] + w1 * sh[1:2, :]
            rp = pltpu.roll(rp, shift=(-(a * w)) % L, axis=1)  # p -> rp[p+a*w]
            row_ok = jnp.logical_and(row + a >= 0, row + a < h)
            acc = acc + jnp.where(row_ok, rp, 0.0)

        sa_ref[0] = jax.nn.sigmoid(acc[:, :hw])               # lane-dense (1, HW)


# --------------------------------------------------------------------------
# K3: out = sa * ca * x   (streamed; reads x again instead of a stored ca*x)
# --------------------------------------------------------------------------
def _final_scale_kernel(x_ref, ca_ref, sa_ref, o_ref):
    # Tail-tile lanes beyond HW read garbage but are per-lane independent and
    # never written back to HBM by Pallas.
    xt = x_ref[0].astype(jnp.float32)                         # (C, hw_tile)
    o_ref[0] = (xt * ca_ref[0] * sa_ref[0]).astype(o_ref.dtype)


# --------------------------------------------------------------------------
# Wrapper: full BasicNetwork forward
# --------------------------------------------------------------------------
def basic_network(x, w_fc1, w_fc2, w_sa, hw_tile=None):
    """x: (B,C,H,W); w_fc1: (C//r,C,1,1); w_fc2: (C,C//r,1,1); w_sa: (1,2,7,7)."""
    B, C, H, W = x.shape
    Cr = w_fc1.shape[0]
    HW = H * W

    # Generation-aware tiling: big blocks on 128-MiB VMEM (v5e/v6e), capped on
    # 64-MiB-per-TC v7x.  K3 is the binding term (~4 x-sized blocks live).
    vmem_cap = _vmem_capacity_bytes()
    if vmem_cap >= 96 * 1024 * 1024:          # v5e / v6e (128 MiB VMEM)
        target_bytes = 12 * 1024 * 1024
        vmem_limit = 80 * 1024 * 1024
    else:                                      # v7x (64 MiB / TC) or unknown
        target_bytes = 6 * 1024 * 1024
        vmem_limit = 40 * 1024 * 1024

    if hw_tile is None:
        hw_tile = _pick_hw_tile(HW, C, x.dtype.itemsize, target_bytes)
    nk = pl.cdiv(HW, hw_tile)
    mask_tail = (HW % hw_tile) != 0

    x_flat = x.reshape(B, C, HW)                               # native dtype
    w1 = w_fc1.reshape(Cr, C).astype(jnp.float32)
    w2 = w_fc2.reshape(C, Cr).astype(jnp.float32)
    w_sa_flat = w_sa.reshape(-1).astype(jnp.float32)           # (98,)

    # --- K1: channel-attention scale (B, C, 1) ------------------------------
    ca = pl.pallas_call(
        functools.partial(_ca_pool_mlp_kernel,
                          hw=HW, hw_tile=hw_tile, mask_tail=mask_tail),
        out_shape=jax.ShapeDtypeStruct((B, C, 1), jnp.float32),
        grid=(B, nk),
        in_specs=[
            pl.BlockSpec((1, C, hw_tile), lambda b, k: (b, 0, k)),
            pl.BlockSpec((Cr, C), lambda b, k: (0, 0)),
            pl.BlockSpec((C, Cr), lambda b, k: (0, 0)),
        ],
        out_specs=pl.BlockSpec((1, C, 1), lambda b, k: (b, 0, 0)),
        scratch_shapes=[pltpu.VMEM((C, 1), jnp.float32),
                        pltpu.VMEM((C, 1), jnp.float32)],
        compiler_params=pltpu.CompilerParams(
            dimension_semantics=("parallel", "arbitrary"),
            vmem_limit_bytes=vmem_limit),
    )(x_flat, w1, w2)

    # --- K2 (fused): spatial attention sa (B, 1, HW), lane dense ------------
    sa = pl.pallas_call(
        functools.partial(_sa_fused_kernel, h=H, w=W, hw=HW, hw_tile=hw_tile),
        out_shape=jax.ShapeDtypeStruct((B, 1, HW), jnp.float32),
        grid=(B, nk),
        in_specs=[
            pl.BlockSpec((1, C, hw_tile), lambda b, k: (b, 0, k)),
            pl.BlockSpec((1, C, 1), lambda b, k: (b, 0, 0)),
            pl.BlockSpec(memory_space=pltpu.MemorySpace.SMEM),
        ],
        out_specs=pl.BlockSpec((1, 1, HW), lambda b, k: (b, 0, 0)),
        scratch_shapes=[pltpu.VMEM((2, nk * hw_tile), jnp.float32)],
        compiler_params=pltpu.CompilerParams(
            dimension_semantics=("parallel", "arbitrary"),
            vmem_limit_bytes=vmem_limit),
    )(x_flat, ca, w_sa_flat)

    # --- K3: out = sa * ca * x ----------------------------------------------
    # TODO(synk): add input_output_aliases={0: 0} if the caller donates x.
    out_flat = pl.pallas_call(
        _final_scale_kernel,
        out_shape=jax.ShapeDtypeStruct((B, C, HW), x.dtype),
        grid=(B, nk),
        in_specs=[
            pl.BlockSpec((1, C, hw_tile), lambda b, k: (b, 0, k)),
            pl.BlockSpec((1, C, 1), lambda b, k: (b, 0, 0)),
            pl.BlockSpec((1, 1, hw_tile), lambda b, k: (b, 0, k)),
        ],
        out_specs=pl.BlockSpec((1, C, hw_tile), lambda b, k: (b, 0, k)),
        compiler_params=pltpu.CompilerParams(
            dimension_semantics=("parallel", "parallel"),
            vmem_limit_bytes=vmem_limit),
    )(x_flat, ca, sa)

    return out_flat.reshape(B, C, H, W)


# --------------------------------------------------------------------------
# Pure-JAX reference mirroring the PyTorch BasicNetwork
# --------------------------------------------------------------------------
def basic_network_reference(x, w_fc1, w_fc2, w_sa):
    B, C, H, W = x.shape
    Cr = w_fc1.shape[0]
    xf = x.astype(jnp.float32)
    w1 = w_fc1.reshape(Cr, C).astype(jnp.float32)
    w2 = w_fc2.reshape(C, Cr).astype(jnp.float32)

    avg_p = jnp.mean(xf, axis=(2, 3))
    max_p = jnp.max(xf, axis=(2, 3))

    def mlp(p):  # (B, C)
        return jnp.maximum(p @ w1.T, 0.0) @ w2.T

    ca = jax.nn.sigmoid(mlp(avg_p) + mlp(max_p)).reshape(B, C, 1, 1)
    out1 = ca * xf

    ch_avg = jnp.mean(out1, axis=1, keepdims=True)
    ch_max = jnp.max(out1, axis=1, keepdims=True)
    cat = jnp.concatenate([ch_avg, ch_max], axis=1)            # (B, 2, H, W)
    sa = jax.lax.conv_general_dilated(
        cat, w_sa.astype(jnp.float32), window_strides=(1, 1),
        padding=((3, 3), (3, 3)),
        dimension_numbers=("NCHW", "OIHW", "NCHW"))
    sa = jax.nn.sigmoid(sa)                                    # (B, 1, H, W)
    return (sa * out1).astype(x.dtype)


if __name__ == "__main__":
    B, C, H, W = 2, 64, 16, 16        # in_planes=64 (module default), ratio=8
    ratio = 8
    Cr = C // ratio

    key = jax.random.PRNGKey(0)
    kx, k1, k2, k3 = jax.random.split(key, 4)

    x = jax.random.normal(kx, (B, C, H, W), dtype=jnp.float32)
    w_fc1 = jax.random.normal(k1, (Cr, C, 1, 1), dtype=jnp.float32) * 0.1
    w_fc2 = jax.random.normal(k2, (C, Cr, 1, 1), dtype=jnp.float32) * 0.1
    w_sa = jax.random.normal(k3, (1, 2, 7, 7), dtype=jnp.float32) * 0.1

    # hw_tile=128 exercises the multi-step HW reduction / scratch accumulation
    # at this toy size; leave None for real shapes (auto, generation-aware).
    out = basic_network(x, w_fc1, w_fc2, w_sa, hw_tile=128)
    out = jax.block_until_ready(out)

    ref = basic_network_reference(x, w_fc1, w_fc2, w_sa)
    assert out.shape == (B, C, H, W)
    assert jnp.allclose(out, ref, atol=1e-4, rtol=1e-4), float(
        jnp.max(jnp.abs(out - ref)))

    print("KERNEL_OK")
</pallas_src>

<mosaic_0001>
module attributes {stable_mosaic.version = 11 : i64} {
  func.func @_ca_pool_mlp_kernel(%arg0: i32, %arg1: i32, %arg2: memref<1x64x128xf32, #tpu.memory_space<vmem>>, %arg3: memref<8x64xf32, #tpu.memory_space<vmem>>, %arg4: memref<64x8xf32, #tpu.memory_space<vmem>>, %arg5: memref<1x64x1xf32, #tpu.memory_space<vmem>>, %arg6: memref<64x1xf32, #tpu.memory_space<vmem>>, %arg7: memref<64x1xf32, #tpu.memory_space<vmem>>) attributes {dimension_semantics = [#tpu.dimension_semantics<parallel>, #tpu.dimension_semantics<arbitrary>], iteration_bounds = array<i64: 2, 2>, scalar_prefetch = 0 : i64, scratch_operands = 2 : i64, tpu.core_type = #tpu.core_type<tc>, window_params = [{transform_indices = @transform_0, window_bounds = array<i64: 1, 64, 128>}, {pipeline_mode = #tpu.pipeline_mode<synchronous>, transform_indices = @transform_1, window_bounds = array<i64: 8, 64>}, {pipeline_mode = #tpu.pipeline_mode<synchronous>, transform_indices = @transform_2, window_bounds = array<i64: 64, 8>}, {transform_indices = @transform_3, window_bounds = array<i64: 1, 64, 1>}]} {
    %c0_i32 = arith.constant 0 : i32
    %0 = arith.cmpi eq, %arg1, %c0_i32 : i32
    %1 = arith.extui %0 : i1 to i32
    %c0_i32_0 = arith.constant 0 : i32
    %2 = arith.cmpi ne, %1, %c0_i32_0 : i32
    scf.if %2 {
      %cst_13 = arith.constant 0.000000e+00 : f32
      %18 = vector.broadcast %cst_13 : f32 to vector<64x1xf32>
      %c0_14 = arith.constant 0 : index
      %c0_15 = arith.constant 0 : index
      %19 = vector.load %arg6[%c0_14, %c0_15] : memref<64x1xf32, #tpu.memory_space<vmem>>, vector<64x1xf32>
      tpu.vector_store %arg6[%c0_14, %c0_15], %18 {strides = array<i32>} : memref<64x1xf32, #tpu.memory_space<vmem>>, vector<64x1xf32>,
      %cst_16 = arith.constant 0xFF800000 : f32
      %20 = vector.broadcast %cst_16 : f32 to vector<64x1xf32>
      %c0_17 = arith.constant 0 : index
      %c0_18 = arith.constant 0 : index
      %21 = vector.load %arg7[%c0_17, %c0_18] : memref<64x1xf32, #tpu.memory_space<vmem>>, vector<64x1xf32>
      tpu.vector_store %arg7[%c0_17, %c0_18], %20 {strides = array<i32>} : memref<64x1xf32, #tpu.memory_space<vmem>>, vector<64x1xf32>,
    } else {
    }
    %c0 = arith.constant 0 : index
    %c0_1 = arith.constant 0 : index
    %c0_2 = arith.constant 0 : index
    %3 = vector.load %arg2[%c0, %c0_1, %c0_2] : memref<1x64x128xf32, #tpu.memory_space<vmem>>, vector<1x64x128xf32>
    %4 = vector.shape_cast %3 : vector<1x64x128xf32> to vector<64x128xf32>
    %c0_3 = arith.constant 0 : index
    %c0_4 = arith.constant 0 : index
    %5 = vector.load %arg6[%c0_3, %c0_4] : memref<64x1xf32, #tpu.memory_space<vmem>>, vector<64x1xf32>
    %cst = arith.constant dense<0.000000e+00> : vector<64xf32>
    %6 = vector.multi_reduction <add>, %4, %cst [1] : vector<64x128xf32> to vector<64xf32>
    %7 = vector.shape_cast %6 : vector<64xf32> to vector<64x1xf32>
    %8 = arith.addf %5, %7 : vector<64x1xf32>
    %c0_5 = arith.constant 0 : index
    %c0_6 = arith.constant 0 : index
    %9 = vector.load %arg6[%c0_5, %c0_6] : memref<64x1xf32, #tpu.memory_space<vmem>>, vector<64x1xf32>
    tpu.vector_store %arg6[%c0_5, %c0_6], %8 {strides = array<i32>} : memref<64x1xf32, #tpu.memory_space<vmem>>, vector<64x1xf32>,
    %c0_7 = arith.constant 0 : index
    %c0_8 = arith.constant 0 : index
    %10 = vector.load %arg7[%c0_7, %c0_8] : memref<64x1xf32, #tpu.memory_space<vmem>>, vector<64x1xf32>
    %cst_9 = arith.constant dense<0xFF800000> : vector<64xf32>
    %11 = vector.multi_reduction <maximumf>, %4, %cst_9 [1] : vector<64x128xf32> to vector<64xf32>
    %12 = vector.shape_cast %11 : vector<64xf32> to vector<64x1xf32>
    %13 = arith.maximumf %10, %12 : vector<64x1xf32>
    %c0_10 = arith.constant 0 : index
    %c0_11 = arith.constant 0 : index
    %14 = vector.load %arg7[%c0_10, %c0_11] : memref<64x1xf32, #tpu.memory_space<vmem>>, vector<64x1xf32>
    tpu.vector_store %arg7[%c0_10, %c0_11], %13 {strides = array<i32>} : memref<64x1xf32, #tpu.memory_space<vmem>>, vector<64x1xf32>,
    %c1_i32 = arith.constant 1 : i32
    %15 = arith.cmpi eq, %arg1, %c1_i32 : i32
    %16 = arith.extui %15 : i1 to i32
    %c0_i32_12 = arith.constant 0 : i32
    %17 = arith.cmpi ne, %16, %c0_i32_12 : i32
    scf.if %17 {
      %c0_13 = arith.constant 0 : index
      %c0_14 = arith.constant 0 : index
      %18 = vector.load %arg6[%c0_13, %c0_14] : memref<64x1xf32, #tpu.memory_space<vmem>>, vector<64x1xf32>
      %cst_15 = arith.constant 3.906250e-03 : f32
      %19 = vector.broadcast %cst_15 : f32 to vector<64x1xf32>
      %20 = arith.mulf %18, %19 : vector<64x1xf32>
      %c0_16 = arith.constant 0 : index
      %c0_17 = arith.constant 0 : index
      %21 = vector.load %arg7[%c0_16, %c0_17] : memref<64x1xf32, #tpu.memory_space<vmem>>, vector<64x1xf32>
      %22 = tpu.concatenate %20, %21 in 1 : vector<64x1xf32>, vector<64x1xf32> -> vector<64x2xf32>
      %c0_18 = arith.constant 0 : index
      %c0_19 = arith.constant 0 : index
      %23 = vector.load %arg3[%c0_18, %c0_19] : memref<8x64xf32, #tpu.memory_space<vmem>>, vector<8x64xf32>
      %cst_20 = arith.constant dense<0.000000e+00> : vector<8x2xf32>
      %24 = tpu.matmul %23, %22, %cst_20 {dimension_numbers = #tpu.dot_dimension_numbers<[1], [0], [0], [1], [0, 0, 1, 1], [], []>} : vector<8x64xf32>, vector<64x2xf32>, vector<8x2xf32> -> vector<8x2xf32>
      %cst_21 = arith.constant 0.000000e+00 : f32
      %25 = vector.broadcast %cst_21 : f32 to vector<8x2xf32>
      %26 = arith.maximumf %24, %25 : vector<8x2xf32>
      %c0_22 = arith.constant 0 : index
      %c0_23 = arith.constant 0 : index
      %27 = vector.load %arg4[%c0_22, %c0_23] : memref<64x8xf32, #tpu.memory_space<vmem>>, vector<64x8xf32>
      %cst_24 = arith.constant dense<0.000000e+00> : vector<64x2xf32>
      %28 = tpu.matmul %27, %26, %cst_24 {dimension_numbers = #tpu.dot_dimension_numbers<[1], [0], [0], [1], [0, 0, 1, 1], [], []>} : vector<64x8xf32>, vector<8x2xf32>, vector<64x2xf32> -> vector<64x2xf32>
      %29 = vector.extract_strided_slice %28 {offsets = [0, 0], sizes = [64, 1], strides = [1, 1]} : vector<64x2xf32> to vector<64x1xf32>
      %30 = vector.extract_strided_slice %28 {offsets = [0, 1], sizes = [64, 1], strides = [1, 1]} : vector<64x2xf32> to vector<64x1xf32>
      %31 = arith.addf %29, %30 : vector<64x1xf32>
      %32 = arith.negf %31 : vector<64x1xf32>
      %33 = math.exp %32 : vector<64x1xf32>
      %cst_25 = arith.constant 1.000000e+00 : f32
      %34 = vector.broadcast %cst_25 : f32 to vector<64x1xf32>
      %35 = arith.addf %34, %33 : vector<64x1xf32>
      %36 = arith.divf %34, %35 : vector<64x1xf32>
      %c0_26 = arith.constant 0 : index
      %c0_27 = arith.constant 0 : index
      %c0_28 = arith.constant 0 : index
      %37 = vector.load %arg5[%c0_26, %c0_27, %c0_28] : memref<1x64x1xf32, #tpu.memory_space<vmem>>, vector<1x64x1xf32>
      %38 = vector.shape_cast %37 : vector<1x64x1xf32> to vector<64x1xf32>
      %39 = vector.shape_cast %36 : vector<64x1xf32> to vector<1x64x1xf32>
      tpu.vector_store %arg5[%c0_26, %c0_27, %c0_28], %39 {strides = array<i32>} : memref<1x64x1xf32, #tpu.memory_space<vmem>>, vector<1x64x1xf32>,
    } else {
    }
    return
  }
  func.func @transform_0(%arg0: i32, %arg1: i32) -> (i32, i32, i32) {
    %c0_i32 = arith.constant 0 : i32
    %c0_i32_0 = arith.constant 0 : i32
    return %arg0, %c0_i32, %arg1 : i32, i32, i32
  }
  func.func @transform_1(%arg0: i32, %arg1: i32) -> (i32, i32) {
    %c0_i32 = arith.constant 0 : i32
    %c0_i32_0 = arith.constant 0 : i32
    %c0_i32_1 = arith.constant 0 : i32
    return %c0_i32, %c0_i32_0 : i32, i32
  }
  func.func @transform_2(%arg0: i32, %arg1: i32) -> (i32, i32) {
    %c0_i32 = arith.constant 0 : i32
    %c0_i32_0 = arith.constant 0 : i32
    %c0_i32_1 = arith.constant 0 : i32
    return %c0_i32, %c0_i32_0 : i32, i32
  }
  func.func @transform_3(%arg0: i32, %arg1: i32) -> (i32, i32, i32) {
    %c0_i32 = arith.constant 0 : i32
    %c0_i32_0 = arith.constant 0 : i32
    %c0_i32_1 = arith.constant 0 : i32
    return %arg0, %c0_i32, %c0_i32_0 : i32, i32, i32
  }
}

</mosaic_0001>

<bundles_post_ra>
// kernel: tpu_custom_call.1
= control target key start
LH: loop header
LB: loop body
LE: loop exit
PB: predicated region body
PF: predicated region fallthrough
CT: control target
= control target key end

     0   :  { %8 = vsyncpa [#allocation5], 0  ;;  %s1388_s0 = inlined_call_operand.hbm [shape: f32[2,64,256], index: 0, kind: input, shape index: {}]   ;;  %s1389_s1 = inlined_call_operand.vmem [shape: f32[8,64], index: 1, kind: input, shape index: {}]   ;;  %s1390_s2 = inlined_call_operand.vmem [shape: f32[64,8], index: 2, kind: input, shape index: {}]   ;;  %s1391_s3 = inlined_call_operand.vmem [shape: f32[2,64,1], index: 3, kind: output, shape index: {}]  }
   0x1   :  { %10 = vsyncpa [#allocation5 + $0x1], 0  ;;  %s1132_s12 = smov 0   ;;  %s1134_s13 = smov 0  }
   0x2   :  { %s1136_s14 = smov 0   ;;  %s1138_s15 = smov 0  }
   0x3   :  { %s1140_s16 = smov 0   ;;  %s1142_s17 = smov 0  }
   0x4   :  { %s1144_s18 = smov 0   ;;  %s1146_s19 = smov 0  }
   0x5 LB: > { %s774_s20 = sadd.s32 4294967295, %s1099_s19   ;;  %s25_s21 = sadd.s32 1, %s1091_s17  ;;  %s1099_s19 = sphi %s1146_s19, %s16_s19   ;;  %s1095_s18 = sphi %s1144_s18, %s1402_s18   ;;  %s1091_s17 = sphi %s1142_s17, %s1401_s17   ;;  %s1087_s16 = sphi %s1140_s16, %s1400_s16   ;;  %s1083_s15 = sphi %s1138_s15, %s1399_s15   ;;  %s1079_s14 = sphi %s1136_s14, %s1398_s14   ;;  %s1075_s13 = sphi %s1134_s13, %s1397_s13   ;;  %s1071_s12 = sphi %s1132_s12, %s1396_s12  }
   0x6   : > { %p26_p0 = scmp.ge.s32.totalorder %s25_s21, 2  ;;  %s28_s22 = sadd.s32 1, %s1095_s18 }
   0x7   : > { %s37_s23 = sadd.s32 1, %s1079_s14  ;;  %p44_p1 = scmp.ne.s32.totalorder %s1079_s14, %s1075_s13 }
   0x8   : > { %s1404_s21 = smov (%p26_p0, %s25_s21), 0  ;;  %s1406_s22 = smov (!%p26_p0, %s28_s22), %s1095_s18 }
   0x9   : > { %s33_s24 = ssub.s32 %s1091_s17, %s1404_s21  ;;  %p45_p2 = scmp.eq.s32.totalorder %s1099_s19, 0 }
   0xa   : > { %p30_p3 = scmp.ge.s32.totalorder %s1406_s22, 2  ;;  %p50_p4 = scmp.ne.s32.totalorder %s1075_s13, %s1071_s12 }
   0xb   : > { %p1183_p5 = por %p45_p2, %p44_p1  ;;  %p51_p6 = scmp.eq.s32.totalorder %s774_s20, 0 }
   0xc   : > { %s1408_s22 = smov (%p30_p3, %s1406_s22), 0  ;;  %p876_p8 = scmp.lt.s32.totalorder %s1099_s19, 4 }
   0xd   : > { %p1189_p7 = por %p51_p6, %p50_p4  ;;  %s32_s27 = ssub.s32 %s1095_s18, %s1408_s22 }
   0xe   : > { %s34_s28 = sor.u32 %s33_s24, %s32_s27  ;;  %s148_s29 = sand.u32 1, %s1079_s14  }
   0xf   : > { %p35_p9 = scmp.eq.s32.totalorder %s34_s28, 0  ;;  %s778_s30 = sshll.u32 %s148_s29, 6 }
  0x10   : > { %s779_s4 = sshll.u32 %s1095_s18, 4  ;;  %s152_s8 = scalar_lea.vmem [#allocation4], %s778_s30 }
  0x11   : > { %s1199_s5 = scalar_select %p35_p9, %s1079_s14, %s37_s23  }
  0x12   : > { %s157_s6 = sadd.s32 %s1091_s17, %s779_s4  ;;  %s160_s9 = sshll.u32 %s152_s8, 4  ;;  %s1207_s9 = int_to_ptr.vmem [resolvable:$true] %s160_s9 }
  0x13   : > { %s780_s7 = sshll.u32 %s157_s6, 7  ;;  %p1213_p10 = pnand %p876_p8, %p1183_p5 }
  0x14   : > { %s1205_s12 = scalar_lea.hbm %s1388_s0, %s780_s7  ;;  %s1218_s23 = scalar_lea.sflag [#allocation5], %s148_s29 }
  0x15   : > { %s1003_s24 = scalar_lea.hbm %s1205_s12, 1024  ;;  %p1005_p13 = pneg %p1213_p10 }
  0x16   : > { %p1004_p12 = scmp.ne.s32.totalorder %s1205_s12, %s1003_s24  ;;  %s1008_s28 = scalar_lea.hbm %s1388_s0, 4096 }
  0x17   : > { %p1009_p2 = scmp.lt.u32.totalorder %s1205_s12, %s1388_s0  ;;  %p1010_p3 = scmp.lt.u32.totalorder %s1008_s28, %s1003_s24 }
  0x18   : > { %p1006_p0 = pnand %p1005_p13, %p1004_p12  ;;  %p1012_p5 = scmp.lt.u32.totalorder %s1003_s24, %s1205_s12 }
  0x19   : > { %p1011_p4 = por %p1010_p3, %p1009_p2 }
  0x1a   : > { %p1007_p1 = pneg %p1006_p0 }
  0x1b   : > { %p1013_p6 = por %p1012_p5, %p1011_p4 }
  0x1d   : > { %p1014_p8 = pnand %p1013_p6, %p1007_p1 }
  0x1f   : > { %1017 = shalt.err (!%p1014_p8)
}
  0x20   : > { %s1018_s29 = scalar_lea.vmem %s1207_s9, 1024  ;;  %s1101_s6 = smov [#allocation4]  }
  0x21   : > { %p1019_p9 = scmp.ne.s32.totalorder %s1207_s9, %s1018_s29  ;;  %s1023_s7 = sshll.u32 %s1101_s6, 4  ;;  %s1024_s7 = int_to_ptr.vmem [resolvable:$false] %s1023_s7 }
  0x22   : > { %s1025_s8 = scalar_lea.vmem %s1024_s7, 2048  ;;  %p1026_p11 = scmp.lt.s32.totalorder %s1207_s9, %s1024_s7 }
  0x23   : > { %p1021_p12 = pnand %p1019_p9, %p1005_p13  ;;  %p1027_p2 = scmp.lt.s32.totalorder %s1025_s8, %s1018_s29 }
  0x25   : > { %p1022_p0 = pneg %p1021_p12  ;;  %p1028_p3 = por %p1027_p2, %p1026_p11 }
  0x27   : > { %p1029_p4 = pnand %p1028_p3, %p1022_p0 }
  0x29   : > { %1032 = shalt.err (!%p1029_p4)
}
  0x2a   : > { %s1102_s10 = smov 256   ;;  %s1103_s11 = smov 128  }
  0x2b   : > { %s1104_s24 = smov 8   ;;  %p168_p13 = scmp.lt.s32.totalorder %s1099_s19, 5 }
  0x2c   : > { %875 = dma.hbm_to_vmem [thread:$0]  (!%p1213_p10), %s1205_s12, 1024, %s1207_s9, %s1218_s23, %s1102_s10, %s1103_s11, %s1104_s24  }
  0x2d   : > { %p1395_p1 = scmp.ge.s32.totalorder %s1099_s19, 1 }
  0x2f   : > { %p169_p5 = pnand %p1395_p1, %p168_p13 }
  0x30   : > { %s174_s27 = sand.u32 (!%p169_p5), 1, %s1075_s13  }
  0x31   : > { %172 = sbr.rel (%p169_p5) target bundleno = 961 (0x3c1), region = 32  ;;  %s782_s25 = sshll.u32 (!%p169_p5), %s174_s27, 6 }
  0x32   : > { %s175_s28 = scalar_lea.sflag (!%p169_p5), [#allocation5], %s174_s27  ;;  %s1250_s30 = scalar_lea.vmem (!%p169_p5), [#allocation4], %s782_s25 }
  0x38   : > { %1066 = dma.done.wait (%p1189_p7), %s175_s28, 1024  }
  0x39   : > { %1068 = vsyncadd (%p1189_p7), %s175_s28, 4294966272  ;;  %p201_p11 = scmp.lt.s32.totalorder %s1087_s16, 1  ;;  %p785_p10 = scmp.ne.s32.totalorder %s1083_s15, 0 }
  0x3a   : > { %vm210_vm0 = vcmask (!%p785_p10), 7168   ;;  %v1105_v0 = vmov (!%p785_p10), 0.0   ;;  %v1106_v1 = vmov (!%p785_p10), -inf  }
  0x3b   : > { %s1410_s16 = smov (!%p201_p11, %s1087_s16), 1  ;;  %209 = sbr.rel (%p785_p10) target bundleno = 68 (0x44), region = 40 }
  0x3c   : > { %s806_s9 = sshll.u32 %s1410_s16, 6  ;;  %211 = vst.msk [vmem:[#allocation2] sm:$0xff] (!%p785_p10), %vm210_vm0, %v1105_v0  ;;  %212 = vst.msk [vmem:[#allocation2 + $0x8] sm:$0xff] (!%p785_p10), %vm210_vm0, %v1105_v0 }
  0x3d   : > { %s1261_s23 = scalar_lea.vmem %s1391_s3, %s806_s9  ;;  %213 = vst.msk [vmem:[#allocation2 + $0x10] sm:$0xff] (!%p785_p10), %vm210_vm0, %v1105_v0  ;;  %214 = vst.msk [vmem:[#allocation2 + $0x18] sm:$0xff] (!%p785_p10), %vm210_vm0, %v1105_v0 }
  0x3e   : > { %215 = vst.msk [vmem:[#allocation2 + $0x20] sm:$0xff] (!%p785_p10), %vm210_vm0, %v1105_v0  ;;  %216 = vst.msk [vmem:[#allocation2 + $0x28] sm:$0xff] (!%p785_p10), %vm210_vm0, %v1105_v0 }
  0x3f   : > { %217 = vst.msk [vmem:[#allocation2 + $0x30] sm:$0xff] (!%p785_p10), %vm210_vm0, %v1105_v0  ;;  %218 = vst.msk [vmem:[#allocation2 + $0x38] sm:$0xff] (!%p785_p10), %vm210_vm0, %v1105_v0 }
  0x40   : > { %219 = vst.msk [vmem:[#allocation3] sm:$0xff] (!%p785_p10), %vm210_vm0, %v1106_v1  ;;  %220 = vst.msk [vmem:[#allocation3 + $0x8] sm:$0xff] (!%p785_p10), %vm210_vm0, %v1106_v1 }
  0x41   : > { %221 = vst.msk [vmem:[#allocation3 + $0x10] sm:$0xff] (!%p785_p10), %vm210_vm0, %v1106_v1  ;;  %222 = vst.msk [vmem:[#allocation3 + $0x18] sm:$0xff] (!%p785_p10), %vm210_vm0, %v1106_v1 }
  0x42   : > { %223 = vst.msk [vmem:[#allocation3 + $0x20] sm:$0xff] %vm210_vm0, %v1106_v1  ;;  %224 = vst.msk [vmem:[#allocation3 + $0x28] sm:$0xff] %vm210_vm0, %v1106_v1 }
  0x43   : > { %225 = vst.msk [vmem:[#allocation3 + $0x30] sm:$0xff] %vm210_vm0, %v1106_v1  ;;  %226 = vst.msk [vmem:[#allocation3 + $0x38] sm:$0xff] %vm210_vm0, %v1106_v1 }
  0x44 PF: > { %v229_v2 = vld [vmem:[%s1250_s30 + $0x10] sm:$0xff]  ;;  %v227_v3 = vld [vmem:[%s1250_s30] sm:$0xff]  ;;  %v230_v4 = vld [vmem:[%s1250_s30 + $0x18] sm:$0xff]  ;;  %vm267_vm1 = vcmask 7168   ;;  %p786_p7 = scmp.ne.s32.totalorder %s1083_s15, 1 }
  0x45   : > { %247 = vadd.xlane.f32.xlu1 %v229_v2  ;;  %243 = vadd.xlane.f32.xlu0 %v227_v3  ;;  %v228_v5 = vld [vmem:[%s1250_s30 + $0x8] sm:$0xff]  ;;  %v231_v7 = vld [vmem:[%s1250_s30 + $0x20] sm:$0xff]  ;;  %v234_v8 = vld [vmem:[%s1250_s30 + $0x38] sm:$0xff]  ;;  %v1107_v1 = vmov (!%p786_p7), 0.0|0.0   ;;  %s1108_s16 = smov (!%p786_p7), 1   ;;  %vm1109_vm2 = vmmov (!%p786_p7), 0  }
  0x46   : > { %v232_v6 = vld [vmem:[%s1250_s30 + $0x28] sm:$0xff]  ;;  %v233_v9 = vld [vmem:[%s1250_s30 + $0x30] sm:$0xff]  ;;  %v235_v11 = vld [vmem:[#allocation2] sm:$0xff]  ;;  %858 = vmatprep.subr.bf16.mxu0 (!%p786_p7), %v1107_v1  ;;  %vm385_vm3 = vcmask (!%p786_p7), 523264   ;;  %vm468_vm4 = vcmask (!%p786_p7), 64512   ;;  %s1111_s15 = smov (!%p786_p7), 127  }
  0x47   : > { %v237_v10 = vld [vmem:[#allocation2 + $0x10] sm:$0xff]  ;;  %v238_v16 = vld [vmem:[#allocation2 + $0x18] sm:$0xff]  ;;  %v236_v17 = vld [vmem:[#allocation2 + $0x8] sm:$0xff] }
  0x48   : > { %v240_v22 = vld [vmem:[#allocation2 + $0x28] sm:$0xff]  ;;  %v239_v23 = vld [vmem:[#allocation2 + $0x20] sm:$0xff]  ;;  %v242_v28 = vld [vmem:[#allocation2 + $0x38] sm:$0xff] }
  0x49   : > { %249 = vadd.xlane.f32.xlu1 %v230_v4  ;;  %245 = vadd.xlane.f32.xlu0 %v228_v5  ;;  %v241_v29 = vld [vmem:[#allocation2 + $0x30] sm:$0xff]  ;;  %v277_v34 = vld [vmem:[#allocation3 + $0x8] sm:$0xff]  ;;  %v276_v35 = vld [vmem:[#allocation3] sm:$0xff] }
  0x4a   : > { %v279_v40 = vld [vmem:[#allocation3 + $0x18] sm:$0xff]  ;;  %v278_v41 = vld [vmem:[#allocation3 + $0x10] sm:$0xff]  ;;  %v281_v46 = vld [vmem:[#allocation3 + $0x28] sm:$0xff] }
  0x4b   : > { %v280_v47 = vld [vmem:[#allocation3 + $0x20] sm:$0xff]  ;;  %v283_v52 = vld [vmem:[#allocation3 + $0x38] sm:$0xff]  ;;  %v282_v53 = vld [vmem:[#allocation3 + $0x30] sm:$0xff] }
  0x4d   : > { %253 = vadd.xlane.f32.xlu1 %v232_v6  ;;  %251 = vadd.xlane.f32.xlu0 %v231_v7 }
  0x51   : > { %257 = vadd.xlane.f32.xlu1 %v234_v8  ;;  %255 = vadd.xlane.f32.xlu0 %v233_v9 }
  0x55   : > { %286 = vmax.xlane.f32.xlu1 %v228_v5  ;;  %284 = vmax.xlane.f32.xlu0 %v227_v3 }
  0x59   : > { %290 = vmax.xlane.f32.xlu1 %v230_v4  ;;  %288 = vmax.xlane.f32.xlu0 %v229_v2 }
  0x5d   : > { %294 = vmax.xlane.f32.xlu1 %v232_v6  ;;  %292 = vmax.xlane.f32.xlu0 %v231_v7  ;;  %v1110_v7 = vmov (!%p786_p7), 0.0  }
  0x5e   : > { %841 = vmatprep.mubr.msk.f32.mxu0 (!%p786_p7), %vm1109_vm2, %v1110_v7 }
  0x61   : > { %298 = vmax.xlane.f32.xlu1 %v234_v8  ;;  %296 = vmax.xlane.f32.xlu0 %v233_v9 }
  0xd2   : > { %v248_v12 = vpop.xlane.xlu1 %247  ;;  %v244_v13 = vpop.xlane.xlu0 %243 }
  0xd3   : > { %v261_v14 = vadd.f32 %v248_v12, %v237_v10  ;;  %v259_v15 = vadd.f32 %v244_v13, %v235_v11 }
  0xd5   : > { %270 = vst.msk [vmem:[#allocation2 + $0x10] sm:$0xff] %vm267_vm1, %v261_v14  ;;  %268 = vst.msk [vmem:[#allocation2] sm:$0xff] %vm267_vm1, %v259_v15 }
  0xd6   : > { %v250_v18 = vpop.xlane.xlu1 %249  ;;  %v246_v19 = vpop.xlane.xlu0 %245 }
  0xd7   : > { %v262_v20 = vadd.f32 %v250_v18, %v238_v16  ;;  %v260_v21 = vadd.f32 %v246_v19, %v236_v17 }
  0xd9   : > { %271 = vst.msk [vmem:[#allocation2 + $0x18] sm:$0xff] %vm267_vm1, %v262_v20  ;;  %269 = vst.msk [vmem:[#allocation2 + $0x8] sm:$0xff] %vm267_vm1, %v260_v21 }
  0xda   : > { %v254_v24 = vpop.xlane.xlu1 %253  ;;  %v252_v25 = vpop.xlane.xlu0 %251 }
  0xdb   : > { %v264_v26 = vadd.f32 %v254_v24, %v240_v22  ;;  %v263_v27 = vadd.f32 %v252_v25, %v239_v23 }
  0xdc   : > { %v320_v8 = vld [vmem:[#allocation2] sm:$0xff] (!%p786_p7)  ;;  %v322_v15 = vld [vmem:[#allocation2 + $0x10] sm:$0xff] (!%p786_p7) }
  0xdd   : > { %273 = vst.msk [vmem:[#allocation2 + $0x28] sm:$0xff] %vm267_vm1, %v264_v26  ;;  %272 = vst.msk [vmem:[#allocation2 + $0x20] sm:$0xff] %vm267_vm1, %v263_v27  ;;  %v328_v10 = vmul.f32 (!%p786_p7), 0.00390625, %v320_v8  ;;  %v330_v24 = vmul.f32 (!%p786_p7), 0.00390625, %v322_v15 }
  0xde   : > { %v258_v30 = vpop.xlane.xlu1 %257  ;;  %v256_v31 = vpop.xlane.xlu0 %255 }
  0xdf   : > { %v266_v32 = vadd.f32 %v258_v30, %v242_v28  ;;  %v265_v33 = vadd.f32 %v256_v31, %v241_v29 }
  0xe0   : > { %v321_v9 = vld [vmem:[#allocation2 + $0x8] sm:$0xff] (!%p786_p7)  ;;  %v323_v16 = vld [vmem:[#allocation2 + $0x18] sm:$0xff] (!%p786_p7) }
  0xe1   : > { %275 = vst.msk [vmem:[#allocation2 + $0x38] sm:$0xff] %vm267_vm1, %v266_v32  ;;  %274 = vst.msk [vmem:[#allocation2 + $0x30] sm:$0xff] %vm267_vm1, %v265_v33  ;;  %v329_v11 = vmul.f32 (!%p786_p7), 0.00390625, %v321_v9  ;;  %v331_v25 = vmul.f32 (!%p786_p7), 0.00390625, %v323_v16 }
  0xe2   : > { %v287_v36 = vpop.xlane.xlu1 %286  ;;  %v285_v37 = vpop.xlane.xlu0 %284 }
  0xe3   : > { %v301_v38 = vmax.f32 %v277_v34, %v287_v36  ;;  %v300_v39 = vmax.f32 %v276_v35, %v285_v37 }
  0xe4   : > { %v324_v12 = vld [vmem:[#allocation2 + $0x20] sm:$0xff] (!%p786_p7)  ;;  %v325_v13 = vld [vmem:[#allocation2 + $0x28] sm:$0xff] (!%p786_p7) }
  0xe5   : > { %309 = vst.msk [vmem:[#allocation3 + $0x8] sm:$0xff] %vm267_vm1, %v301_v38  ;;  %308 = vst.msk [vmem:[#allocation3] sm:$0xff] %vm267_vm1, %v300_v39  ;;  %v332_v22 = vmul.f32 (!%p786_p7), 0.00390625, %v324_v12  ;;  %v333_v23 = vmul.f32 (!%p786_p7), 0.00390625, %v325_v13 }
  0xe6   : > { %v291_v42 = vpop.xlane.xlu1 %290  ;;  %v289_v43 = vpop.xlane.xlu0 %288 }
  0xe7   : > { %v303_v44 = vmax.f32 %v279_v40, %v291_v42  ;;  %v302_v45 = vmax.f32 %v278_v41, %v289_v43 }
  0xe8   : > { %v326_v28 = vld [vmem:[#allocation2 + $0x30] sm:$0xff] (!%p786_p7)  ;;  %v327_v29 = vld [vmem:[#allocation2 + $0x38] sm:$0xff] (!%p786_p7) }
  0xe9   : > { %311 = vst.msk [vmem:[#allocation3 + $0x18] sm:$0xff] %vm267_vm1, %v303_v44  ;;  %310 = vst.msk [vmem:[#allocation3 + $0x10] sm:$0xff] %vm267_vm1, %v302_v45  ;;  %v334_v37 = vmul.f32 (!%p786_p7), 0.00390625, %v326_v28  ;;  %v335_v38 = vmul.f32 (!%p786_p7), 0.00390625, %v327_v29 }
  0xea   : > { %v295_v48 = vpop.xlane.xlu1 %294  ;;  %v293_v49 = vpop.xlane.xlu0 %292 }
  0xeb   : > { %v305_v50 = vmax.f32 %v281_v46, %v295_v48  ;;  %v304_v51 = vmax.f32 %v280_v47, %v293_v49  ;;  %319 = sbr.rel (%p786_p7) target bundleno = 961 (0x3c1), region = 44  ;;  %v384_v48 = vld [vmem:[%s1389_s1] sm:$0xff] (!%p786_p7) }
  0xec   : > { %v336_v58 = vld [vmem:[#allocation3] sm:$0xff] (!%p786_p7)  ;;  %v337_v59 = vld [vmem:[#allocation3 + $0x8] sm:$0xff] (!%p786_p7) }
  0xed   : > { %313 = vst.msk [vmem:[#allocation3 + $0x28] sm:$0xff] %vm267_vm1, %v305_v50  ;;  %312 = vst.msk [vmem:[#allocation3 + $0x20] sm:$0xff] %vm267_vm1, %v304_v51  ;;  %v951_v61 = vpack.i.bf16 (!%p786_p7), %v337_v59, %v336_v58  ;;  %v460_v49 = vld [vmem:[%s1390_s2] sm:$0xff] (!%p786_p7)  ;;  %v466_v58 = vld [vmem:[%s1390_s2 + $0x30] sm:$0xff] (!%p786_p7) }
  0xee   : > { %v299_v54 = vpop.xlane.xlu1 %298  ;;  %v297_v55 = vpop.xlane.xlu0 %296  ;;  %846 = vmatprep.mubr.msk.f32.mxu1 (!%p786_p7), %vm468_vm4, %v460_v49  ;;  %v467_v59 = vld [vmem:[%s1390_s2 + $0x38] sm:$0xff] (!%p786_p7) }
  0xef   : > { %v307_v56 = vmax.f32 %v283_v52, %v299_v54  ;;  %v306_v57 = vmax.f32 %v282_v53, %v297_v55  ;;  %952 = vrot.lane.b32.xlu0 (!%p786_p7), %v951_v61, %s1108_s16  ;;  %v461_v53 = vld [vmem:[%s1390_s2 + $0x8] sm:$0xff] (!%p786_p7)  ;;  %v462_v54 = vld [vmem:[%s1390_s2 + $0x10] sm:$0xff] (!%p786_p7)  ;;  %v463_v55 = vld [vmem:[%s1390_s2 + $0x18] sm:$0xff] (!%p786_p7) }
  0xf0   : > { %v338_v60 = vld [vmem:[#allocation3 + $0x10] sm:$0xff] (!%p786_p7)  ;;  %v339_v62 = vld [vmem:[#allocation3 + $0x18] sm:$0xff] (!%p786_p7) }
  0xf1   : > { %315 = vst.msk [vmem:[#allocation3 + $0x38] sm:$0xff] %vm267_vm1, %v307_v56  ;;  %314 = vst.msk [vmem:[#allocation3 + $0x30] sm:$0xff] %vm267_vm1, %v306_v57  ;;  %v956_v5 = vpack.i.bf16 (!%p786_p7), %v339_v62, %v338_v60  ;;  %v464_v56 = vld [vmem:[%s1390_s2 + $0x20] sm:$0xff] (!%p786_p7)  ;;  %v465_v57 = vld [vmem:[%s1390_s2 + $0x28] sm:$0xff] (!%p786_p7) }
  0xf3   : > { %957 = vrot.lane.b32.xlu0 %v956_v5, %s1108_s16 }
  0xf4   : > { %v340_v63 = vld [vmem:[#allocation3 + $0x20] sm:$0xff]  ;;  %v341_v0 = vld [vmem:[#allocation3 + $0x28] sm:$0xff] }
  0xf5   : > { %v961_v2 = vpack.i.bf16 %v341_v0, %v340_v63 }
  0xf7   : > { %962 = vrot.lane.b32.xlu1 %v961_v2, %s1108_s16 }
  0xf8   : > { %v342_v3 = vld [vmem:[#allocation3 + $0x30] sm:$0xff]  ;;  %v343_v4 = vld [vmem:[#allocation3 + $0x38] sm:$0xff] }
  0xf9   : > { %v966_v6 = vpack.i.bf16 %v343_v4, %v342_v3 }
  0xfb   : > { %967 = vrot.lane.b32.xlu1 %v966_v6, %s1108_s16 }
 0x161   : > { %v953_v14 = vpop.permute.xlu0 %952 }
 0x162   : > { %v955_v17 = vunpack.i.h.bf16 %v953_v14  ;;  %v954_v18 = vunpack.i.l.bf16 %v953_v14 }
 0x164   : > { %v376_v26 = vsel %vm267_vm1, %v328_v10, %v954_v18  ;;  %v377_v27 = vsel %vm267_vm1, %v329_v11, %v955_v17 }
 0x165   : > { %v958_v30 = vpop.permute.xlu0 %957  ;;  %v859_v31 = vpack.c.bf16 %v377_v27, %v376_v26 }
 0x166   : > { %v960_v32 = vunpack.i.h.bf16 %v958_v30  ;;  %v959_v33 = vunpack.i.l.bf16 %v958_v30 }
 0x167   : > { %860 = vmatpush3.bf16.msra.mxu0 %v859_v31 }
 0x168   : > { %v378_v39 = vsel %vm267_vm1, %v330_v24, %v959_v33  ;;  %v379_v40 = vsel %vm267_vm1, %v331_v25, %v960_v32  ;;  %861 = vmatprep.subr.bf16.mxu0 %v1107_v1 }
 0x169   : > { %v963_v19 = vpop.permute.xlu1 %962  ;;  %v862_v43 = vpack.c.bf16 %v379_v40, %v378_v39 }
 0x16a   : > { %v965_v20 = vunpack.i.h.bf16 %v963_v19  ;;  %v964_v21 = vunpack.i.l.bf16 %v963_v19 }
 0x16b   : > { %863 = vmatpush3.bf16.msra.mxu0 %v862_v43 }
 0x16c   : > { %v380_v35 = vsel %vm267_vm1, %v332_v22, %v964_v21  ;;  %v381_v36 = vsel %vm267_vm1, %v333_v23, %v965_v20  ;;  %864 = vmatprep.subr.bf16.mxu0 %v1107_v1 }
 0x16d   : > { %v968_v34 = vpop.permute.xlu1 %967  ;;  %v865_v44 = vpack.c.bf16 %v381_v36, %v380_v35 }
 0x16e   : > { %v970_v41 = vunpack.i.h.bf16 %v968_v34  ;;  %v969_v42 = vunpack.i.l.bf16 %v968_v34 }
 0x16f   : > { %866 = vmatpush3.bf16.msra.mxu0 %v865_v44 }
 0x170   : > { %v382_v45 = vsel %vm267_vm1, %v334_v37, %v969_v42  ;;  %v383_v46 = vsel %vm267_vm1, %v335_v38, %v970_v41  ;;  %867 = vmatprep.subr.bf16.mxu0 %v1107_v1 }
 0x171   : > { %v868_v47 = vpack.c.bf16 %v383_v46, %v382_v45 }
 0x173   : > { %869 = vmatpush3.bf16.msra.mxu0 %v868_v47 }
 0x176   : > { %842 = vmatmul.mubr.msk.f32.vlgmr.msra.gmra.mrb[0].mxu0 %vm385_vm3, %v384_v48 }
 0x249   : > { %v455_v50 = vpop.f32.mrb[0].mxu0 }
 0x24a   : > { %v459_v51 = vmax.f32 %v455_v50, 0.0  ;;  %v843_v52 = vpop.f32.mrb[1].mxu0 }
 0x24c   : > { %844 = vmatprep.subr.mxu1 %v459_v51 }
 0x24d   : > { %845 = vmatpush3.msra.mxu1 %v459_v51 }
 0x24e   : > { %847 = vmatmul.mubr.msk.f32.vlgmr.msra.gmra.mrb[0].mxu1 %vm468_vm4, %v461_v53 }
 0x24f   : > { %849 = vmatprep.mubr.msk.f32.mxu1 %vm468_vm4, %v462_v54 }
 0x252   : > { %850 = vmatmul.mubr.msk.f32.gmra.mrb[2].mxu1 %vm468_vm4, %v463_v55 }
 0x253   : > { %852 = vmatprep.mubr.msk.f32.mxu1 %vm468_vm4, %v464_v56 }
 0x256   : > { %853 = vmatmul.mubr.msk.f32.gmra.mrb[4].mxu1 %vm468_vm4, %v465_v57 }
 0x257   : > { %855 = vmatprep.mubr.msk.f32.mxu1 %vm468_vm4, %v466_v58 }
 0x25a   : > { %856 = vmatmul.mubr.msk.f32.gmra.mrb[6].mxu1 %vm468_vm4, %v467_v59 }
 0x321   : > { %v848_v60 = vpop.f32.mrb[0].mxu1 }
 0x322   : > { %608 = vrot.lane.b32.xlu1 %v848_v60, %s1111_s15  ;;  %v559_v61 = vpop.f32.mrb[1].mxu1 }
 0x323   : > { %606 = vrot.lane.b32.xlu0 %v559_v61, %s1111_s15 }
 0x325   : > { %v851_v62 = vpop.f32.mrb[2].mxu1 }
 0x326   : > { %612 = vrot.lane.b32.xlu1 %v851_v62, %s1111_s15  ;;  %v569_v63 = vpop.f32.mrb[3].mxu1 }
 0x327   : > { %610 = vrot.lane.b32.xlu0 %v569_v63, %s1111_s15 }
 0x329   : > { %v854_v0 = vpop.f32.mrb[4].mxu1 }
 0x32a   : > { %616 = vrot.lane.b32.xlu1 %v854_v0, %s1111_s15  ;;  %v579_v1 = vpop.f32.mrb[5].mxu1 }
 0x32b   : > { %614 = vrot.lane.b32.xlu0 %v579_v1, %s1111_s15 }
 0x32d   : > { %v857_v2 = vpop.f32.mrb[6].mxu1 }
 0x32e   : > { %620 = vrot.lane.b32.xlu1 %v857_v2, %s1111_s15  ;;  %v589_v3 = vpop.f32.mrb[7].mxu1 }
 0x32f   : > { %618 = vrot.lane.b32.xlu0 %v589_v3, %s1111_s15 }
 0x394   : > { %v609_v4 = vpop.permute.xlu1 %608 }
 0x395   : > { %v631_v5 = vadd.f32 %v848_v60, %v609_v4  ;;  %v607_v6 = vpop.permute.xlu0 %606 }
 0x396   : > { %v630_v7 = vadd.f32 %v607_v6, %v559_v61 }
 0x397   : > { %v797_v8 = vmul.f32 -1.442695, %v631_v5 }
 0x398   : > { %v796_v9 = vmul.f32 -1.442695, %v630_v7  ;;  %v613_v10 = vpop.permute.xlu1 %612 }
 0x399   : > { %971 = vpow2.f32 %v797_v8  ;;  %v633_v11 = vadd.f32 %v851_v62, %v613_v10  ;;  %v611_v12 = vpop.permute.xlu0 %610 }
 0x39a   : > { %973 = vpow2.f32 %v796_v9  ;;  %v632_v13 = vadd.f32 %v611_v12, %v569_v63 }
 0x39b   : > { %v799_v14 = vmul.f32 -1.442695, %v633_v11 }
 0x39c   : > { %v798_v15 = vmul.f32 -1.442695, %v632_v13  ;;  %v617_v16 = vpop.permute.xlu1 %616 }
 0x39d   : > { %975 = vpow2.f32 %v799_v14  ;;  %v635_v17 = vadd.f32 %v854_v0, %v617_v16  ;;  %v615_v18 = vpop.permute.xlu0 %614 }
 0x39e   : > { %977 = vpow2.f32 %v798_v15  ;;  %v634_v19 = vadd.f32 %v615_v18, %v579_v1 }
 0x39f   : > { %v801_v20 = vmul.f32 -1.442695, %v635_v17 }
 0x3a0   : > { %v800_v21 = vmul.f32 -1.442695, %v634_v19  ;;  %v621_v22 = vpop.permute.xlu1 %620 }
 0x3a1   : > { %979 = vpow2.f32 %v801_v20  ;;  %v637_v23 = vadd.f32 %v857_v2, %v621_v22  ;;  %v619_v24 = vpop.permute.xlu0 %618 }
 0x3a2   : > { %981 = vpow2.f32 %v800_v21  ;;  %v636_v25 = vadd.f32 %v619_v24, %v589_v3 }
 0x3a3   : > { %v972_v26 = vpop.eup %971  ;;  %v803_v27 = vmul.f32 -1.442695, %v637_v23 }
 0x3a4   : > { %v974_v28 = vpop.eup %973  ;;  %v663_v29 = vadd.f32 1.0, %v972_v26  ;;  %v802_v30 = vmul.f32 -1.442695, %v636_v25 }
 0x3a5   : > { %v662_v31 = vadd.f32 1.0, %v974_v28  ;;  %983 = vpow2.f32 %v803_v27 }
 0x3a6   : > { %985 = vrcp.f32 %v663_v29 }
 0x3a7   : > { %v976_v32 = vpop.eup %975  ;;  %987 = vrcp.f32 %v662_v31 }
 0x3a8   : > { %v978_v33 = vpop.eup %977  ;;  %v665_v34 = vadd.f32 1.0, %v976_v32  ;;  %989 = vpow2.f32 %v802_v30 }
 0x3a9   : > { %v664_v35 = vadd.f32 1.0, %v978_v33 }
 0x3aa   : > { %991 = vrcp.f32 %v665_v34 }
 0x3ab   : > { %v980_v36 = vpop.eup %979  ;;  %993 = vrcp.f32 %v664_v35 }
 0x3ac   : > { %v982_v37 = vpop.eup %981  ;;  %v667_v38 = vadd.f32 1.0, %v980_v36 }
 0x3ad   : > { %v666_v39 = vadd.f32 1.0, %v982_v37 }
 0x3ae   : > { %995 = vrcp.f32 %v667_v38 }
 0x3af   : > { %v984_v40 = vpop.eup %983  ;;  %997 = vrcp.f32 %v666_v39 }
 0x3b0   : > { %v986_v41 = vpop.eup %985  ;;  %v669_v42 = vadd.f32 1.0, %v984_v40 }
 0x3b1   : > { %v988_v43 = vpop.eup %987  ;;  %687 = vst.msk [vmem:[%s1261_s23 + $0x8] sm:$0xff] %vm267_vm1, %v986_v41 }
 0x3b2   : > { %v990_v44 = vpop.eup %989  ;;  %686 = vst.msk [vmem:[%s1261_s23] sm:$0xff] %vm267_vm1, %v988_v43  ;;  %999 = vrcp.f32 %v669_v42 }
 0x3b3   : > { %v668_v45 = vadd.f32 1.0, %v990_v44 }
 0x3b4   : > { %v992_v46 = vpop.eup %991 }
 0x3b5   : > { %v994_v47 = vpop.eup %993  ;;  %689 = vst.msk [vmem:[%s1261_s23 + $0x18] sm:$0xff] %vm267_vm1, %v992_v46  ;;  %1001 = vrcp.f32 %v668_v45 }
 0x3b6   : > { %688 = vst.msk [vmem:[%s1261_s23 + $0x10] sm:$0xff] %vm267_vm1, %v994_v47 }
 0x3b8   : > { %v996_v48 = vpop.eup %995 }
 0x3b9   : > { %v998_v49 = vpop.eup %997  ;;  %691 = vst.msk [vmem:[%s1261_s23 + $0x28] sm:$0xff] %vm267_vm1, %v996_v48 }
 0x3ba   : > { %690 = vst.msk [vmem:[%s1261_s23 + $0x20] sm:$0xff] %vm267_vm1, %v998_v49 }
 0x3bc   : > { %v1000_v50 = vpop.eup %999 }
 0x3bd   : > { %693 = vst.msk [vmem:[%s1261_s23 + $0x38] sm:$0xff] %vm267_vm1, %v1000_v50 }
 0x3bf   : > { %v1002_v51 = vpop.eup %1001 }
 0x3c0   : > { %692 = vst.msk [vmem:[%s1261_s23 + $0x30] sm:$0xff] %vm267_vm1, %v1002_v51 }
 0x3c1 PF: > { %s16_s19 = sadd.s32 1, %s1099_s19   ;;  %s1396_s12 = smov %s1075_s13 }
 0x3c2   : > { %p13_p6 = scmp.ge.s32.totalorder %s16_s19, 6   ;;  %s1397_s13 = smov %s1079_s14 }
 0x3c3   : > { %s1398_s14 = smov %s1199_s5  ;;  %s1399_s15 = smov %s1091_s17 }
 0x3c4   : > { %s1400_s16 = smov %s1095_s18  ;;  %s1401_s17 = smov %s1404_s21 }
 0x3c5   : > { %s1402_s18 = smov %s1408_s22  ;;  %15 = sbr.rel (!%p13_p6) target bundleno = 5 (0x5), region = 80 }
 0x3cc   :  { %715 = vsyncpa [#allocation5], 1 }
 0x3cd   :  { %717 = vsyncpa [#allocation5 + $0x1], 1 }

</bundles_post_ra>
